<compile_context>
chip_gen: v7x
topology: tpu7x:2x2x1
jax: 0.10.0
libtpu: 0.0.40
codegen_flags: <defaults>
</compile_context>

<pallas_src>
import functools

import jax
import jax.numpy as jnp
from jax.experimental import pallas as pl
from jax.experimental.pallas import tpu as pltpu


def _cdiv(a, b):
    return -(-a // b)


def _round_up(n, m):
    return ((n + m - 1) // m) * m


def autoencoder_kernel(x_ref, wg_ref, bg_ref, wh_ref, bh_ref, o_ref):
    # Encoder: (TB, Q) @ (Q, K) -> f32 accum, bias + sigmoid in f32.
    x = x_ref[...].astype(wg_ref.dtype)
    hidden = jnp.dot(x, wg_ref[...], preferred_element_type=jnp.float32)
    hidden = jax.nn.sigmoid(hidden + bg_ref[...])
    # Decoder: (TB, K) @ (K, Q) -> f32 accum, bias + sigmoid in f32.
    out = jnp.dot(hidden.astype(wh_ref.dtype), wh_ref[...],
                  preferred_element_type=jnp.float32)
    out = jax.nn.sigmoid(out + bh_ref[...])
    o_ref[...] = out.astype(o_ref.dtype)


def prepare_params(g_weight, g_bias, h_weight, h_bias,
                   compute_dtype=jnp.bfloat16):
    """One-time parameter prep (outside the per-call forward).

    Transposes nn.Linear weights to (in_features, out_features) and casts them
    to the MXU compute dtype. Biases stay f32 as (1, out_features) rows.
    """
    wg = jnp.asarray(g_weight).T.astype(compute_dtype)        # (Q, K)
    wh = jnp.asarray(h_weight).T.astype(compute_dtype)        # (K, Q)
    bg = jnp.asarray(g_bias, jnp.float32).reshape(1, -1)      # (1, K)
    bh = jnp.asarray(h_bias, jnp.float32).reshape(1, -1)      # (1, Q)
    return wg, bg, wh, bh


def _pick_batch_tile(batch, tb, q, in_bytes, out_bytes):
    """Pick an effective batch tile (multiple of 8).

    - Caps the tile so the double-buffered x+out footprint stays <= ~16 MiB
      (v7x-safe; trivially fits v5e/v6e once vmem_limit_bytes is raised).
    - Forces >= 2 grid steps whenever batch > 8, so v7x's two TensorCores
      both get work on the "parallel" batch axis.
    """
    cap = (16 * 1024 * 1024) // (2 * q * (in_bytes + out_bytes))
    cap = max(8, (cap // 8) * 8)
    tb = max(8, min(_round_up(tb, 8), cap))          # enforce multiple of 8
    n_pairs = _cdiv(batch, 2 * tb)                   # pairs of steps needed
    tb_eff = _round_up(_cdiv(batch, 2 * n_pairs), 8)
    return max(8, min(tb_eff, tb))


@functools.partial(jax.jit, static_argnames=("tb", "out_dtype"))
def autoencoder_forward(x, wg, bg, wh, bh, *, tb=2048, out_dtype=jnp.bfloat16):
    """Fused AutoEncoder forward.

    Args:
      x:  (B, Q) input. f32 or bf16 (bf16 recommended if the producer can
          emit it; the kernel casts to the MXU dtype inside VMEM either way).
      wg: (Q, K) compute-dtype weight (pre-transposed g.weight).
      bg: (1, K) f32 bias.
      wh: (K, Q) compute-dtype weight (pre-transposed h.weight).
      bh: (1, Q) f32 bias.
      tb: requested batch tile (rows per grid step); rounded to a multiple of
          8 and capped for VMEM. Sweep 2048-4096 for very large B.
      out_dtype: output dtype (bf16 default halves HBM write traffic).
    Returns:
      (B, Q) output in `out_dtype`.
    """
    B, Q = x.shape
    K = wg.shape[1]

    out_itemsize = jnp.dtype(out_dtype).itemsize
    tb_eff = _pick_batch_tile(B, tb, Q, x.dtype.itemsize, out_itemsize)
    grid_steps = _cdiv(B, tb_eff)          # ragged last block handled by Pallas
    n_rows = grid_steps * tb_eff           # rows actually computed (incl. waste)

    # Scoped-VMEM request: double-buffered x/out tiles + double-buffered
    # (resident) weights/biases + margin. Clears v5e's 16 MiB default for
    # large tiles; stays far below v7x's 64 MiB physical ceiling.
    vmem_bytes = (2 * tb_eff * Q * (x.dtype.itemsize + out_itemsize)
                  + 2 * (wg.size * wg.dtype.itemsize
                         + wh.size * wh.dtype.itemsize)
                  + 2 * (bg.size + bh.size) * 4
                  + (4 << 20))
    vmem_limit = int(min(64 << 20, max(vmem_bytes, 24 << 20)))

    cost = pl.CostEstimate(
        flops=4 * n_rows * Q * K,                      # two (TB,Q,K) matmuls
        transcendentals=n_rows * (K + Q),              # sigmoid exps
        bytes_accessed=(B * Q * (x.dtype.itemsize + out_itemsize)
                        + wg.size * wg.dtype.itemsize
                        + wh.size * wh.dtype.itemsize
                        + (bg.size + bh.size) * 4),
    )

    out = pl.pallas_call(
        autoencoder_kernel,
        out_shape=jax.ShapeDtypeStruct((B, Q), out_dtype),
        grid_spec=pltpu.PrefetchScalarGridSpec(
            num_scalar_prefetch=0,
            grid=(grid_steps,),
            in_specs=[
                pl.BlockSpec((tb_eff, Q), lambda i: (i, 0)),   # x tile
                pl.BlockSpec((Q, K), lambda i: (0, 0)),        # W_g (resident)
                pl.BlockSpec((1, K), lambda i: (0, 0)),        # b_g (resident)
                pl.BlockSpec((K, Q), lambda i: (0, 0)),        # W_h (resident)
                pl.BlockSpec((1, Q), lambda i: (0, 0)),        # b_h (resident)
            ],
            out_specs=pl.BlockSpec((tb_eff, Q), lambda i: (i, 0)),
        ),
        compiler_params=pltpu.CompilerParams(
            dimension_semantics=("parallel",),
            vmem_limit_bytes=vmem_limit),
        cost_estimate=cost,
    )(x, wg, bg, wh, bh)

    return out


if __name__ == "__main__":
    # Small, TPU-friendly sizes consistent with AutoEncoder(num_question=256, k=128).
    B = 200            # batch of users (not a tile multiple -> exercises ragged block)
    NUM_QUESTION = 256
    K = 128            # hidden layer size

    key = jax.random.PRNGKey(0)
    kx, kg, kgb, kh, khb = jax.random.split(key, 5)

    x = jax.random.uniform(kx, (B, NUM_QUESTION), dtype=jnp.float32)

    # Deterministic parameter init (mimicking nn.Linear's uniform(-1/sqrt(fan_in), ...)).
    bound_g = 1.0 / jnp.sqrt(NUM_QUESTION)
    g_weight = jax.random.uniform(kg, (K, NUM_QUESTION), jnp.float32,
                                  -bound_g, bound_g)
    g_bias = jax.random.uniform(kgb, (K,), jnp.float32, -bound_g, bound_g)

    bound_h = 1.0 / jnp.sqrt(K)
    h_weight = jax.random.uniform(kh, (NUM_QUESTION, K), jnp.float32,
                                  -bound_h, bound_h)
    h_bias = jax.random.uniform(khb, (NUM_QUESTION,), jnp.float32,
                                -bound_h, bound_h)

    # One-time parameter prep (transpose + bf16 cast happen here, not per call).
    wg, bg, wh, bh = prepare_params(g_weight, g_bias, h_weight, h_bias)

    # Default tb=2048: with B=200 the tile auto-shrinks to 104 rows so the
    # grid still has 2 parallel steps (both v7x TCs busy) and no padding pass.
    out = autoencoder_forward(x, wg, bg, wh, bh)
    out = jax.block_until_ready(out)

    # Cross-check against a pure-JAX f32 reference of the PyTorch forward.
    ref = jax.nn.sigmoid(
        jax.nn.sigmoid(x @ g_weight.T + g_bias) @ h_weight.T + h_bias)
    assert out.shape == (B, NUM_QUESTION)
    assert out.dtype == jnp.bfloat16
    # bf16 MXU operands / bf16 output with f32 accumulation: loosened tolerance.
    err = jnp.max(jnp.abs(out.astype(jnp.float32) - ref))
    assert jnp.allclose(out.astype(jnp.float32), ref, atol=2e-2, rtol=0), float(err)

    print("KERNEL_OK")
</pallas_src>

<mosaic_0001>
module attributes {stable_mosaic.version = 11 : i64} {
  func.func @autoencoder_kernel(%arg0: i32, %arg1: memref<104x256xf32, #tpu.memory_space<vmem>>, %arg2: memref<256x128xbf16, #tpu.memory_space<vmem>>, %arg3: memref<1x128xf32, #tpu.memory_space<vmem>>, %arg4: memref<128x256xbf16, #tpu.memory_space<vmem>>, %arg5: memref<1x256xf32, #tpu.memory_space<vmem>>, %arg6: memref<104x256xbf16, #tpu.memory_space<vmem>>) attributes {dimension_semantics = [#tpu.dimension_semantics<parallel>], iteration_bounds = array<i64: 2>, scalar_prefetch = 0 : i64, scratch_operands = 0 : i64, tpu.core_type = #tpu.core_type<tc>, window_params = [{transform_indices = @transform_0, window_bounds = array<i64: 104, 256>}, {pipeline_mode = #tpu.pipeline_mode<synchronous>, transform_indices = @transform_1, window_bounds = array<i64: 256, 128>}, {pipeline_mode = #tpu.pipeline_mode<synchronous>, transform_indices = @transform_2, window_bounds = array<i64: 1, 128>}, {pipeline_mode = #tpu.pipeline_mode<synchronous>, transform_indices = @transform_3, window_bounds = array<i64: 128, 256>}, {pipeline_mode = #tpu.pipeline_mode<synchronous>, transform_indices = @transform_4, window_bounds = array<i64: 1, 256>}, {transform_indices = @transform_5, window_bounds = array<i64: 104, 256>}]} {
    %c0 = arith.constant 0 : index
    %c0_0 = arith.constant 0 : index
    %0 = vector.load %arg1[%c0, %c0_0] : memref<104x256xf32, #tpu.memory_space<vmem>>, vector<104x256xf32>
    %1 = arith.truncf %0 : vector<104x256xf32> to vector<104x256xbf16>
    %c0_1 = arith.constant 0 : index
    %c0_2 = arith.constant 0 : index
    %2 = vector.load %arg2[%c0_1, %c0_2] : memref<256x128xbf16, #tpu.memory_space<vmem>>, vector<256x128xbf16>
    %cst = arith.constant dense<0.000000e+00> : vector<104x128xf32>
    %3 = tpu.matmul %1, %2, %cst {dimension_numbers = #tpu.dot_dimension_numbers<[1], [0], [0], [1], [0, 0, 1, 1], [], []>} : vector<104x256xbf16>, vector<256x128xbf16>, vector<104x128xf32> -> vector<104x128xf32>
    %c0_3 = arith.constant 0 : index
    %c0_4 = arith.constant 0 : index
    %4 = vector.load %arg3[%c0_3, %c0_4] : memref<1x128xf32, #tpu.memory_space<vmem>>, vector<1x128xf32>
    %5 = vector.broadcast %4 : vector<1x128xf32> to vector<104x128xf32>
    %6 = arith.addf %3, %5 : vector<104x128xf32>
    %7 = arith.negf %6 : vector<104x128xf32>
    %8 = math.exp %7 : vector<104x128xf32>
    %cst_5 = arith.constant 1.000000e+00 : f32
    %9 = vector.broadcast %cst_5 : f32 to vector<104x128xf32>
    %10 = arith.addf %9, %8 : vector<104x128xf32>
    %11 = arith.divf %9, %10 : vector<104x128xf32>
    %12 = arith.truncf %11 : vector<104x128xf32> to vector<104x128xbf16>
    %c0_6 = arith.constant 0 : index
    %c0_7 = arith.constant 0 : index
    %13 = vector.load %arg4[%c0_6, %c0_7] : memref<128x256xbf16, #tpu.memory_space<vmem>>, vector<128x256xbf16>
    %cst_8 = arith.constant dense<0.000000e+00> : vector<104x256xf32>
    %14 = tpu.matmul %12, %13, %cst_8 {dimension_numbers = #tpu.dot_dimension_numbers<[1], [0], [0], [1], [0, 0, 1, 1], [], []>} : vector<104x128xbf16>, vector<128x256xbf16>, vector<104x256xf32> -> vector<104x256xf32>
    %c0_9 = arith.constant 0 : index
    %c0_10 = arith.constant 0 : index
    %15 = vector.load %arg5[%c0_9, %c0_10] : memref<1x256xf32, #tpu.memory_space<vmem>>, vector<1x256xf32>
    %16 = vector.broadcast %15 : vector<1x256xf32> to vector<104x256xf32>
    %17 = arith.addf %14, %16 : vector<104x256xf32>
    %18 = arith.negf %17 : vector<104x256xf32>
    %19 = math.exp %18 : vector<104x256xf32>
    %cst_11 = arith.constant 1.000000e+00 : f32
    %20 = vector.broadcast %cst_11 : f32 to vector<104x256xf32>
    %21 = arith.addf %20, %19 : vector<104x256xf32>
    %22 = arith.divf %20, %21 : vector<104x256xf32>
    %23 = arith.truncf %22 : vector<104x256xf32> to vector<104x256xbf16>
    %c0_12 = arith.constant 0 : index
    %c0_13 = arith.constant 0 : index
    %24 = vector.load %arg6[%c0_12, %c0_13] : memref<104x256xbf16, #tpu.memory_space<vmem>>, vector<104x256xbf16>
    tpu.vector_store %arg6[%c0_12, %c0_13], %23 {strides = array<i32>} : memref<104x256xbf16, #tpu.memory_space<vmem>>, vector<104x256xbf16>,
    return
  }
  func.func @transform_0(%arg0: i32) -> (i32, i32) {
    %c0_i32 = arith.constant 0 : i32
    %c0_i32_0 = arith.constant 0 : i32
    return %arg0, %c0_i32 : i32, i32
  }
  func.func @transform_1(%arg0: i32) -> (i32, i32) {
    %c0_i32 = arith.constant 0 : i32
    %c0_i32_0 = arith.constant 0 : i32
    %c0_i32_1 = arith.constant 0 : i32
    return %c0_i32, %c0_i32_0 : i32, i32
  }
  func.func @transform_2(%arg0: i32) -> (i32, i32) {
    %c0_i32 = arith.constant 0 : i32
    %c0_i32_0 = arith.constant 0 : i32
    %c0_i32_1 = arith.constant 0 : i32
    return %c0_i32, %c0_i32_0 : i32, i32
  }
  func.func @transform_3(%arg0: i32) -> (i32, i32) {
    %c0_i32 = arith.constant 0 : i32
    %c0_i32_0 = arith.constant 0 : i32
    %c0_i32_1 = arith.constant 0 : i32
    return %c0_i32, %c0_i32_0 : i32, i32
  }
  func.func @transform_4(%arg0: i32) -> (i32, i32) {
    %c0_i32 = arith.constant 0 : i32
    %c0_i32_0 = arith.constant 0 : i32
    %c0_i32_1 = arith.constant 0 : i32
    return %c0_i32, %c0_i32_0 : i32, i32
  }
  func.func @transform_5(%arg0: i32) -> (i32, i32) {
    %c0_i32 = arith.constant 0 : i32
    %c0_i32_0 = arith.constant 0 : i32
    return %arg0, %c0_i32 : i32, i32
  }
}

</mosaic_0001>

<bundles_post_ra>
// kernel: autoencoder_forward.1
= control target key start
LH: loop header
LB: loop body
LE: loop exit
PB: predicated region body
PF: predicated region fallthrough
CT: control target
= control target key end

     0   :  { %10 = vsyncpa [#allocation3], 0  ;;  %s2216_s0 = inlined_call_operand.hbm [shape: f32[200,256], index: 0, kind: input, shape index: {}]   ;;  %s2217_s1 = inlined_call_operand.hbm [shape: bf16[256,128], index: 1, kind: input, shape index: {}]   ;;  %s2218_s2 = inlined_call_operand.vmem [shape: f32[1,128], index: 2, kind: input, shape index: {}]   ;;  %s2219_s3 = inlined_call_operand.hbm [shape: bf16[128,256], index: 3, kind: input, shape index: {}]   ;;  %s2220_s4 = inlined_call_operand.vmem [shape: f32[1,256], index: 4, kind: input, shape index: {}]   ;;  %s2221_s5 = inlined_call_operand.hbm [shape: bf16[200,256], index: 5, kind: output, shape index: {}]  }
   0x1   :  { %12 = vsyncpa [#allocation3 + $0x1], 0 }
   0x2   :  { %13 = vsyncpa [#allocation6], 0 }
   0x3   :  { %14 = vsyncpa [#allocation4], 0 }
   0x4   :  { %16 = vsyncpa [#allocation4 + $0x1], 0  ;;  %s1868_s18 = smov 0   ;;  %s1870_s19 = smov 0  }
   0x5   :  { %s1872_s20 = smov 0   ;;  %s1874_s21 = smov 0  }
   0x6 LB: > { %s1889_s22 = sadd.s32 4294967295, %s1823_s21   ;;  %s1213_s23 = sadd.s32 4294967294, %s1823_s21   ;;  %s1823_s21 = sphi %s1874_s21, %s2243_s21   ;;  %s1819_s20 = sphi %s1872_s20, %s2242_s20   ;;  %s1815_s19 = sphi %s1870_s19, %s2241_s19   ;;  %s1811_s18 = sphi %s1868_s18, %s2240_s18  }
   0x7   : > { %s1893_s24 = sadd.s32 1, %s1823_s21   ;;  %s29_s25 = sadd.s32 1, %s1819_s20 }
   0x8   : > { %s26_s26 = ssub.s32 %s1823_s21, %s1893_s24  ;;  %p36_p0 = scmp.ne.s32.totalorder %s1819_s20, %s1815_s19 }
   0x9   : > { %p27_p1 = scmp.eq.s32.totalorder %s26_s26, 0  ;;  %p37_p2 = scmp.eq.s32.totalorder %s1823_s21, 0 }
   0xa   : > { %p42_p3 = scmp.ne.s32.totalorder %s1815_s19, %s1811_s18  ;;  %p2222_p4 = scmp.eq.s32.totalorder %s1889_s22, 0 }
   0xb   : > { %s1905_s27 = scalar_select %p27_p1, %s1819_s20, %s29_s25  }
   0xc   : > { %p1907_p5 = por %p37_p2, %p36_p0  ;;  %p1913_p6 = por %p2222_p4, %p42_p3 }
   0xd   : > { %2225 = sst [smem:[#allocation12_spill]] %s1905_s27  ;;  %p150_p7 = scmp.eq.s32.totalorder %s1889_s22, 1 }
   0xe   : > { %s2226_s28 = scalar_select %p1907_p5, 1, 0 }
   0xf   : > { %s2227_s29 = scalar_select %p1913_p6, 1, 0 }
  0x10   : > { %p156_p8 = scmp.eq.s32.totalorder %s1213_s23, 1  ;;  %p1214_p9 = scmp.ge.s32.totalorder %s1823_s21, 1 }
  0x11   : > { %p163_p10 = scmp.lt.s32.totalorder %s1823_s21, 3  ;;  %p1920_p11 = por %p150_p7, %p36_p0 }
  0x12   : > { %p1924_p12 = por %p156_p8, %p42_p3  ;;  %s1825_s8 = smov [#allocation5]  }
  0x13   : > { %s2228_s30 = scalar_select %p1920_p11, 1, 0 }
  0x14   : > { %s2229_s6 = scalar_select %p1924_p12, 1, 0 }
  0x15   : > { %p1928_p13 = pnand %p1214_p9, %p163_p10  ;;  %s175_s9 = sshll.u32 %s1825_s8, 4  ;;  %s176_s9 = int_to_ptr.vmem [resolvable:$true] %s175_s9 }
  0x16   : > { %s1826_s11 = smov [#allocation7]   ;;  %s1669_s15 = scalar_lea.hbm %s2217_s1, 2048 }
  0x17   : > { %s2230_s7 = scalar_select %p1928_p13, 1, 0 }
  0x18   : > { %p1414_p1 = pneg %p1928_p13  ;;  %s191_s12 = sshll.u32 %s1826_s11, 4  ;;  %s1940_s12 = int_to_ptr.vmem [resolvable:$true] %s191_s12 }
  0x19   : > { %p1670_p0 = scmp.ne.s32.totalorder %s2217_s1, %s1669_s15  ;;  %p1676_p9 = scmp.lt.u32.totalorder %s1669_s15, %s2217_s1 }
  0x1a   : > { %p1936_p2 = pnand %p1414_p1, %p2222_p4 }
  0x1c   : > { %p1671_p3 = pneg %p1936_p2 }
  0x1e   : > { %p1672_p7 = pnand %p1671_p3, %p1670_p0 }
  0x20   : > { %p1673_p8 = pneg %p1672_p7 }
  0x22   : > { %p1678_p10 = pnand %p1676_p9, %p1673_p8 }
  0x24   : > { %1681 = shalt.err (!%p1678_p10)
}
  0x25   : > { %s1682_s26 = scalar_lea.vmem %s176_s9, 2048  ;;  %p1690_p11 = scmp.lt.s32.totalorder %s176_s9, %s176_s9 }
  0x26   : > { %p1683_p1 = scmp.ne.s32.totalorder %s176_s9, %s1682_s26  ;;  %p1691_p6 = scmp.lt.s32.totalorder %s1682_s26, %s1682_s26 }
  0x28   : > { %p1685_p4 = pnand %p1683_p1, %p1671_p3  ;;  %p1692_p13 = por %p1691_p6, %p1690_p11 }
  0x2a   : > { %p1686_p12 = pneg %p1685_p4 }
  0x2c   : > { %p1693_p5 = pnand %p1692_p13, %p1686_p12 }
  0x2e   : > { %1696 = shalt.err (!%p1693_p5)
}
  0x2f   : > { %s1827_s8 = smov 64   ;;  %s1828_s11 = smov 4  }
  0x30   : > { %1417 = dma.hbm_to_vmem [thread:$0]  (!%p1936_p2), %s2217_s1, 2048, %s176_s9, [#allocation6], %s1827_s8, %s1827_s8, %s1828_s11  }
  0x31   : > { %s1697_s17 = scalar_lea.hbm %s2219_s3, 2048 }
  0x32   : > { %p1698_p4 = scmp.ne.s32.totalorder %s2219_s3, %s1697_s17  ;;  %p1704_p11 = scmp.lt.u32.totalorder %s1697_s17, %s2219_s3 }
  0x34   : > { %p1700_p5 = pnand %p1698_p4, %p1671_p3 }
  0x36   : > { %p1701_p6 = pneg %p1700_p5 }
  0x38   : > { %p1706_p12 = pnand %p1704_p11, %p1701_p6 }
  0x3a   : > { %1709 = shalt.err (!%p1706_p12)
}
  0x3b   : > { %s1710_s9 = scalar_lea.vmem %s1940_s12, 2048  ;;  %p1718_p8 = scmp.lt.s32.totalorder %s1940_s12, %s1940_s12 }
  0x3c   : > { %p1711_p13 = scmp.ne.s32.totalorder %s1940_s12, %s1710_s9  ;;  %p1719_p9 = scmp.lt.s32.totalorder %s1710_s9, %s1710_s9 }
  0x3e   : > { %p1713_p0 = pnand %p1711_p13, %p1671_p3  ;;  %p1720_p10 = por %p1719_p9, %p1718_p8 }
  0x40   : > { %p1714_p7 = pneg %p1713_p0 }
  0x42   : > { %p1721_p1 = pnand %p1720_p10, %p1714_p7 }
  0x44   : > { %1724 = shalt.err (!%p1721_p1)
}
  0x45   : > { %s1829_s27 = smov 128   ;;  %s1830_s8 = smov 8  }
  0x46   : > { %1420 = dma.hbm_to_vmem [thread:$0]  (!%p1936_p2), %s2219_s3, 2048, %s1940_s12, [#allocation6], %s1829_s27, %s1829_s27, %s1830_s8  }
  0x47   : > { %p1217_p4 = scmp.ge.s32.totalorder %s1823_s21, 2 }
  0x48   : > { %p2232_p3 = scmp.ne.s32.totalorder (!%p1217_p4), %s2226_s28, 0 }
  0x49   : > { %204 = sbr.rel (%p1217_p4) target bundleno = 115 (0x73), region = 32 }
  0x50   : > { %207 = sbr.rel (!%p2232_p3) target bundleno = 115 (0x73), region = 36  ;;  %s208_s14 = sand.u32 (%p2232_p3), 1, %s1819_s20  }
  0x51   : > { %s213_s15 = smul.u32 (%p2232_p3), 13, %s1823_s21  ;;  %s1999_s23 = scalar_lea.sflag (%p2232_p3), [#allocation3], %s208_s14 }
  0x52   : > { %s1401_s16 = smul.u32 (%p2232_p3), 208, %s208_s14 }
  0x53   : > { %s214_s17 = ssub.s32 (%p2232_p3), 25, %s213_s15 }
  0x54   : > { %p215_p5 = scmp.lt.s32.totalorder (%p2232_p3), %s214_s17, 13  ;;  %s212_s25 = scalar_lea.vmem (%p2232_p3), [#allocation2], %s1401_s16 }
  0x57   : > { %s2245_s17 = smov (!%p215_p5, %s214_s17), 13 }
  0x58   : > { %s1996_s10 = sshll.u32 %s2245_s17, 8 }
  0x59   : > { %s220_s12 = ssub.s32 3328, %s1996_s10 }
  0x5a   : > { %221 = vsyncadd %s1999_s23, %s220_s12  ;;  %p1220_p2 = scmp.ne.s32.totalorder %s1996_s10, 0  ;;  %s1341_s28 = smul.u32 3328, %s1823_s21 }
  0x5b   : > { %s227_s26 = sshll.u32 %s212_s25, 4  ;;  %s1729_s15 = scalar_lea.hbm %s2216_s0, 6400  ;;  %s2009_s26 = int_to_ptr.vmem [resolvable:$true] %s227_s26 }
  0x5c   : > { %s2007_s8 = scalar_lea.hbm %s2216_s0, %s1341_s28 }
  0x5d   : > { %s1725_s11 = scalar_lea.hbm %s2007_s8, %s1996_s10  ;;  %p1730_p13 = scmp.lt.u32.totalorder %s2007_s8, %s2216_s0 }
  0x5e   : > { %p1726_p6 = scmp.ne.s32.totalorder %s2007_s8, %s1725_s11  ;;  %p1731_p0 = scmp.lt.u32.totalorder %s1729_s15, %s1725_s11 }
  0x5f   : > { %p1733_p8 = scmp.lt.u32.totalorder %s1725_s11, %s2007_s8 }
  0x60   : > { %p1727_p11 = pnand %p1726_p6, %p1220_p2  ;;  %p1732_p7 = por %p1731_p0, %p1730_p13 }
  0x62   : > { %p1728_p12 = pneg %p1727_p11  ;;  %p1734_p9 = por %p1733_p8, %p1732_p7 }
  0x64   : > { %p1735_p10 = pnand %p1734_p9, %p1728_p12 }
  0x66   : > { %1738 = shalt.err (!%p1735_p10)
}
  0x67   : > { %s1739_s12 = scalar_lea.vmem %s2009_s26, %s1996_s10  ;;  %s1831_s25 = smov [#allocation2]  }
  0x68   : > { %p1740_p1 = scmp.ne.s32.totalorder %s2009_s26, %s1739_s12  ;;  %s1743_s28 = sshll.u32 %s1831_s25, 4  ;;  %s1744_s28 = int_to_ptr.vmem [resolvable:$false] %s1743_s28 }
  0x69   : > { %s1745_s9 = scalar_lea.vmem %s1744_s28, 6656  ;;  %p1746_p6 = scmp.lt.s32.totalorder %s2009_s26, %s1744_s28 }
  0x6a   : > { %p1741_p3 = pnand %p1740_p1, %p1220_p2  ;;  %p1747_p11 = scmp.lt.s32.totalorder %s1745_s9, %s1739_s12 }
  0x6c   : > { %p1742_p5 = pneg %p1741_p3  ;;  %p1748_p13 = por %p1747_p11, %p1746_p6 }
  0x6e   : > { %p1749_p0 = pnand %p1748_p13, %p1742_p5 }
  0x70   : > { %1752 = shalt.err (!%p1749_p0)
}
  0x71   : > { %s1832_s27 = smov 256   ;;  %s1833_s11 = smov 16  }
  0x72   : > { %233 = dma.hbm_to_vmem [thread:$0]  (%p1220_p2), %s2007_s8, %s1996_s10, %s2009_s26, %s1999_s23, %s1832_s27, %s1832_s27, %s1833_s11  }
  0x73 PF: > { %p2233_p12 = scmp.ne.s32.totalorder %s2230_s7, 0 }
  0x74   : > { %s2039_s13 = sand.u32 (!%p2233_p12), 1, %s1815_s19   ;;  %p2234_p7 = scmp.ne.s32.totalorder (!%p2233_p12), %s2227_s29, 0 }
  0x75   : > { %239 = sbr.rel (%p2233_p12) target bundleno = 731 (0x2db), region = 40  ;;  %s242_s15 = scalar_lea.sflag (!%p2233_p12), [#allocation3], %s2039_s13 }
  0x76   : > { %s1402_s14 = smul.u32 (!%p2233_p12), 208, %s2039_s13 }
  0x78   : > { %s2043_s16 = scalar_lea.vmem (!%p2233_p12), [#allocation2], %s1402_s14 }
  0x7c   : > { %1798 = dma.done.wait (%p2234_p7), %s242_s15, 3328  }
  0x7d   : > { %1800 = vsyncadd (%p2234_p7), %s242_s15, 4294963968  ;;  %p2235_p2 = scmp.eq.s32.totalorder %s1889_s22, 0 }
  0x7f   : > { %1802 = dma.done.wait (%p2235_p2), [#allocation6], 4096   ;;  %p2236_p8 = pmov %p2235_p2 }
  0x80   : > { %v1473_v0 = vld [vmem:[#allocation5 + $0x40] sm:$0xff]   ;;  %v1475_v2 = vld [vmem:[#allocation5 + $0x48] sm:$0xff]   ;;  %v1477_v4 = vld [vmem:[#allocation5 + $0x50] sm:$0xff]   ;;  %s1403_s26 = smul.u32 104, %s2039_s13  ;;  %s1100_s17 = scalar_lea.sflag [#allocation4], %s2039_s13 }
  0x81   : > { %1804 = vsyncadd (%p2236_p8), [#allocation6], 4294963200  ;;  %v1474_v1 = vld [vmem:[#allocation5] sm:$0xff]   ;;  %1343 = vmatprep.subr.bf16.mxu0 %v1473_v0  ;;  %v1476_v3 = vld [vmem:[#allocation5 + $0x8] sm:$0xff]   ;;  %p2237_p9 = scmp.ne.s32.totalorder %s2228_s30, 0 }
  0x82   : > { %1344 = vmatpush3.bf16.msra.mxu0 %v1474_v1  ;;  %v1478_v5 = vld [vmem:[#allocation5 + $0x10] sm:$0xff]   ;;  %v1479_v6 = vld [vmem:[#allocation5 + $0x58] sm:$0xff]   ;;  %v1481_v8 = vld [vmem:[#allocation5 + $0x60] sm:$0xff]   ;;  %s2128_s8 = scalar_lea.vmem [#allocation8], %s1403_s26  ;;  %s1107_s12 = smul.u32 (%p2237_p9), 13, %s1889_s22 }
  0x83   : > { %1345 = vmatprep.subr.bf16.mxu0 %v1475_v2  ;;  %v1480_v7 = vld [vmem:[#allocation5 + $0x18] sm:$0xff]   ;;  %v1482_v9 = vld [vmem:[#allocation5 + $0x20] sm:$0xff]   ;;  %v1483_v10 = vld [vmem:[#allocation5 + $0x68] sm:$0xff]  }
  0x84   : > { %v294_v11 = vld [vmem:[%s2043_s16 + $0x8] sm:$0xff]  ;;  %v296_v12 = vld [vmem:[%s2043_s16 + $0x18] sm:$0xff]  ;;  %v1485_v15 = vld [vmem:[#allocation5 + $0x70] sm:$0xff]   ;;  %s1108_s25 = ssub.s32 (%p2237_p9), 25, %s1107_s12 }
  0x85   : > { %v320_v13 = vpack.c.bf16 %v296_v12, %v294_v11  ;;  %v1484_v14 = vld [vmem:[#allocation5 + $0x28] sm:$0xff]   ;;  %v1486_v16 = vld [vmem:[#allocation5 + $0x30] sm:$0xff]   ;;  %v1487_v17 = vld [vmem:[#allocation5 + $0x78] sm:$0xff]   ;;  %p1109_p10 = scmp.lt.s32.totalorder (%p2237_p9), %s1108_s25, 13 }
  0x86   : > { %1346 = vmatpush3.bf16.msra.mxu0 %v1476_v3  ;;  %v1488_v18 = vld [vmem:[#allocation5 + $0x38] sm:$0xff]   ;;  %v293_v19 = vld [vmem:[%s2043_s16] sm:$0xff]  ;;  %v295_v20 = vld [vmem:[%s2043_s16 + $0x10] sm:$0xff] }
  0x87   : > { %1347 = vmatprep.subr.bf16.mxu0 %v1477_v4  ;;  %500 = vmatprep.mubr.bf16.mxu0 %v320_v13  ;;  %v298_v21 = vld [vmem:[%s2043_s16 + $0x28] sm:$0xff]  ;;  %v300_v22 = vld [vmem:[%s2043_s16 + $0x38] sm:$0xff]  ;;  %v319_v23 = vpack.c.bf16 %v295_v20, %v293_v19  ;;  %v297_v25 = vld [vmem:[%s2043_s16 + $0x20] sm:$0xff] }
  0x88   : > { %v322_v24 = vpack.c.bf16 %v300_v22, %v298_v21  ;;  %v299_v26 = vld [vmem:[%s2043_s16 + $0x30] sm:$0xff]  ;;  %v302_v27 = vld [vmem:[%s2043_s16 + $0x48] sm:$0xff]  ;;  %v304_v28 = vld [vmem:[%s2043_s16 + $0x58] sm:$0xff] }
  0x89   : > { %v321_v29 = vpack.c.bf16 %v299_v26, %v297_v25  ;;  %v324_v30 = vpack.c.bf16 %v304_v28, %v302_v27  ;;  %v301_v31 = vld [vmem:[%s2043_s16 + $0x40] sm:$0xff]  ;;  %v303_v32 = vld [vmem:[%s2043_s16 + $0x50] sm:$0xff]  ;;  %v306_v33 = vld [vmem:[%s2043_s16 + $0x68] sm:$0xff] }
  0x8a   : > { %1348 = vmatpush3.bf16.msra.mxu0 %v1478_v5  ;;  %v308_v34 = vld [vmem:[%s2043_s16 + $0x78] sm:$0xff]  ;;  %v323_v35 = vpack.c.bf16 %v303_v32, %v301_v31  ;;  %v305_v37 = vld [vmem:[%s2043_s16 + $0x60] sm:$0xff]  ;;  %v307_v38 = vld [vmem:[%s2043_s16 + $0x70] sm:$0xff] }
  0x8b   : > { %1349 = vmatprep.subr.bf16.mxu0 %v1479_v6  ;;  %v326_v36 = vpack.c.bf16 %v308_v34, %v306_v33  ;;  %v310_v39 = vld [vmem:[%s2043_s16 + $0x88] sm:$0xff]  ;;  %v312_v40 = vld [vmem:[%s2043_s16 + $0x98] sm:$0xff]  ;;  %v325_v41 = vpack.c.bf16 %v307_v38, %v305_v37  ;;  %v309_v43 = vld [vmem:[%s2043_s16 + $0x80] sm:$0xff] }
  0x8c   : > { %v328_v42 = vpack.c.bf16 %v312_v40, %v310_v39  ;;  %v311_v44 = vld [vmem:[%s2043_s16 + $0x90] sm:$0xff]  ;;  %v314_v45 = vld [vmem:[%s2043_s16 + $0xa8] sm:$0xff]  ;;  %v316_v46 = vld [vmem:[%s2043_s16 + $0xb8] sm:$0xff] }
  0x8d   : > { %v327_v47 = vpack.c.bf16 %v311_v44, %v309_v43  ;;  %v330_v48 = vpack.c.bf16 %v316_v46, %v314_v45  ;;  %v313_v49 = vld [vmem:[%s2043_s16 + $0xa0] sm:$0xff]  ;;  %v315_v50 = vld [vmem:[%s2043_s16 + $0xb0] sm:$0xff]  ;;  %v318_v51 = vld [vmem:[%s2043_s16 + $0xc8] sm:$0xff] }
  0x8e   : > { %1350 = vmatpush3.bf16.msra.mxu0 %v1480_v7  ;;  %v329_v52 = vpack.c.bf16 %v315_v50, %v313_v49  ;;  %v332_v53 = vpack.c.bf16 %v318_v51, %v318_v51  ;;  %v317_v54 = vld [vmem:[%s2043_s16 + $0xc0] sm:$0xff] }
  0x8f   : > { %1351 = vmatprep.subr.bf16.mxu0 %v1481_v8  ;;  %v331_v55 = vpack.c.bf16 %v317_v54, %v317_v54  ;;  %v1489_v56 = vld [vmem:[#allocation7 + $0x4] ss:$8 sps:$4 sm:$0xff]   ;;  %v1491_v57 = vld [vmem:[#allocation7] ss:$8 sps:$4 sm:$0xff]   ;;  %v1492_v58 = vld [vmem:[#allocation7 + $0x14] ss:$8 sps:$4 sm:$0xff]  }
  0x90   : > { %749 = vmatprep.subr.bf16.mxu1 %v1489_v56  ;;  %v1494_v59 = vld [vmem:[#allocation7 + $0x10] ss:$8 sps:$4 sm:$0xff]   ;;  %v1495_v60 = vld [vmem:[#allocation7 + $0x24] ss:$8 sps:$4 sm:$0xff]   ;;  %v1497_v61 = vld [vmem:[#allocation7 + $0x20] ss:$8 sps:$4 sm:$0xff]  }
  0x91   : > { %750 = vmatpush1.bf16.msra.mxu1 %v1491_v57  ;;  %v1498_v62 = vld [vmem:[#allocation7 + $0x34] ss:$8 sps:$4 sm:$0xff]   ;;  %v1500_v63 = vld [vmem:[#allocation7 + $0x30] ss:$8 sps:$4 sm:$0xff]   ;;  %v1501_v0 = vld [vmem:[#allocation7 + $0x44] ss:$8 sps:$4 sm:$0xff]  }
  0x92   : > { %1352 = vmatpush3.bf16.msra.mxu0 %v1482_v9  ;;  %751 = vmatprep.subr.bf16.mxu1 %v1492_v58  ;;  %v1503_v1 = vld [vmem:[#allocation7 + $0x40] ss:$8 sps:$4 sm:$0xff]   ;;  %v1504_v2 = vld [vmem:[#allocation7 + $0x54] ss:$8 sps:$4 sm:$0xff]   ;;  %v1506_v3 = vld [vmem:[#allocation7 + $0x50] ss:$8 sps:$4 sm:$0xff]  }
  0x93   : > { %1353 = vmatprep.subr.bf16.mxu0 %v1483_v10  ;;  %v1507_v4 = vld [vmem:[#allocation7 + $0x64] ss:$8 sps:$4 sm:$0xff]   ;;  %v1509_v5 = vld [vmem:[#allocation7 + $0x60] ss:$8 sps:$4 sm:$0xff]   ;;  %v1510_v6 = vld [vmem:[#allocation7 + $0x74] ss:$8 sps:$4 sm:$0xff]  }
  0x94   : > { %v1512_v7 = vld [vmem:[#allocation7 + $0x70] ss:$8 sps:$4 sm:$0xff]   ;;  %v1834_v8 = vmov 0   ;;  %v2083_v10 = vld [vmem:[%s2218_s2] ss:$0 sm:$0xff] }
  0x95   : > { %752 = vmatpush1.bf16.msra.mxu1 %v1494_v59  ;;  %781 = vmatprep.mubr.bf16.mxu1 %v1834_v8 }
  0x96   : > { %1354 = vmatpush3.bf16.msra.mxu0 %v1484_v14  ;;  %753 = vmatprep.subr.bf16.mxu1 %v1495_v60 }
  0x97   : > { %1355 = vmatprep.subr.bf16.mxu0 %v1485_v15 }
  0x99   : > { %754 = vmatpush1.bf16.msra.mxu1 %v1497_v61 }
  0x9a   : > { %1356 = vmatpush3.bf16.msra.mxu0 %v1486_v16  ;;  %755 = vmatprep.subr.bf16.mxu1 %v1498_v62 }
  0x9b   : > { %1357 = vmatprep.subr.bf16.mxu0 %v1487_v17 }
  0x9d   : > { %756 = vmatpush1.bf16.msra.mxu1 %v1500_v63 }
  0x9e   : > { %1358 = vmatpush3.bf16.msra.mxu0 %v1488_v18  ;;  %757 = vmatprep.subr.bf16.mxu1 %v1501_v0 }
  0xa1   : > { %501 = vmatmul.mubr.bf16.vlgmr.msra.gmra.mrb[0].mxu0 %v319_v23  ;;  %758 = vmatpush1.bf16.msra.mxu1 %v1503_v1 }
  0xa2   : > { %508 = vmatprep.mubr.bf16.mxu0 %v322_v24  ;;  %759 = vmatprep.subr.bf16.mxu1 %v1504_v2 }
  0xa5   : > { %760 = vmatpush1.bf16.msra.mxu1 %v1506_v3 }
  0xa6   : > { %761 = vmatprep.subr.bf16.mxu1 %v1507_v4 }
  0xa9   : > { %509 = vmatmul.mubr.bf16.gmra.mrb[4].mxu0 %v321_v29  ;;  %762 = vmatpush1.bf16.msra.mxu1 %v1509_v5 }
  0xaa   : > { %516 = vmatprep.mubr.bf16.mxu0 %v324_v30  ;;  %763 = vmatprep.subr.bf16.mxu1 %v1510_v6 }
  0xad   : > { %764 = vmatpush1.bf16.msra.mxu1 %v1512_v7 }
  0xb1   : > { %517 = vmatmul.mubr.bf16.gmra.mrb[8].mxu0 %v323_v35 }
  0xb2   : > { %524 = vmatprep.mubr.bf16.mxu0 %v326_v36 }
  0xb9   : > { %525 = vmatmul.mubr.bf16.gmra.mrb[12].mxu0 %v325_v41 }
  0xba   : > { %532 = vmatprep.mubr.bf16.mxu0 %v328_v42 }
  0xc1   : > { %533 = vmatmul.mubr.bf16.gmra.mrb[16].mxu0 %v327_v47 }
  0xc2   : > { %540 = vmatprep.mubr.bf16.mxu0 %v330_v48 }
  0xc9   : > { %541 = vmatmul.mubr.bf16.gmra.mrb[20].mxu0 %v329_v52 }
  0xca   : > { %548 = vmatprep.mubr.bf16.mxu0 %v332_v53 }
  0xd1   : > { %549 = vmatmul.mubr.bf16.gmra.mrb[24].mxu0 %v331_v55 }
 0x174   : > { %v1359_v9 = vpop.f32.mrb[0].mxu0 }
 0x175   : > { %v1360_v11 = vpop.f32.mrb[1].mxu0 }
 0x176   : > { %v1361_v12 = vadd.f32 %v1360_v11, %v1359_v9  ;;  %v1362_v13 = vpop.f32.mrb[2].mxu0 }
 0x177   : > { %v1363_v14 = vpop.f32.mrb[3].mxu0 }
 0x178   : > { %v503_v15 = vadd.f32 %v1361_v12, %v2083_v10  ;;  %v1364_v16 = vadd.f32 %v1363_v14, %v1362_v13 }
 0x17a   : > { %v1245_v17 = vmul.f32 -1.442695, %v503_v15  ;;  %v506_v18 = vadd.f32 %v1364_v16, %v2083_v10 }
 0x17c   : > { %1513 = vpow2.f32 %v1245_v17  ;;  %v1246_v19 = vmul.f32 -1.442695, %v506_v18  ;;  %v1365_v20 = vpop.f32.mrb[4].mxu0 }
 0x17d   : > { %v1366_v21 = vpop.f32.mrb[5].mxu0 }
 0x17e   : > { %1515 = vpow2.f32 %v1246_v19  ;;  %v1367_v22 = vadd.f32 %v1366_v21, %v1365_v20  ;;  %v1368_v23 = vpop.f32.mrb[6].mxu0 }
 0x17f   : > { %v1369_v24 = vpop.f32.mrb[7].mxu0 }
 0x180   : > { %v511_v25 = vadd.f32 %v1367_v22, %v2083_v10  ;;  %v1370_v26 = vadd.f32 %v1369_v24, %v1368_v23 }
 0x182   : > { %v1247_v27 = vmul.f32 -1.442695, %v511_v25  ;;  %v514_v28 = vadd.f32 %v1370_v26, %v2083_v10 }
 0x184   : > { %1517 = vpow2.f32 %v1247_v27  ;;  %v1248_v29 = vmul.f32 -1.442695, %v514_v28  ;;  %v1371_v30 = vpop.f32.mrb[8].mxu0 }
 0x185   : > { %v1372_v31 = vpop.f32.mrb[9].mxu0 }
 0x186   : > { %v1514_v32 = vpop.eup %1513  ;;  %1519 = vpow2.f32 %v1248_v29  ;;  %v1373_v33 = vadd.f32 %v1372_v31, %v1371_v30  ;;  %v1374_v34 = vpop.f32.mrb[10].mxu0 }
 0x187   : > { %v595_v35 = vadd.f32 1.0, %v1514_v32  ;;  %v1375_v36 = vpop.f32.mrb[11].mxu0 }
 0x188   : > { %v1516_v37 = vpop.eup %1515  ;;  %v519_v38 = vadd.f32 %v1373_v33, %v2083_v10  ;;  %v1376_v39 = vadd.f32 %v1375_v36, %v1374_v34 }
 0x189   : > { %v596_v40 = vadd.f32 1.0, %v1516_v37  ;;  %1521 = vrcp.f32 %v595_v35 }
 0x18a   : > { %v1249_v41 = vmul.f32 -1.442695, %v519_v38  ;;  %v522_v42 = vadd.f32 %v1376_v39, %v2083_v10 }
 0x18b   : > { %1523 = vrcp.f32 %v596_v40 }
 0x18c   : > { %1525 = vpow2.f32 %v1249_v41  ;;  %v1250_v43 = vmul.f32 -1.442695, %v522_v42  ;;  %v1377_v44 = vpop.f32.mrb[12].mxu0 }
 0x18d   : > { %v1378_v45 = vpop.f32.mrb[13].mxu0 }
 0x18e   : > { %v1518_v46 = vpop.eup %1517  ;;  %1527 = vpow2.f32 %v1250_v43  ;;  %v1379_v47 = vadd.f32 %v1378_v45, %v1377_v44  ;;  %v1380_v48 = vpop.f32.mrb[14].mxu0 }
 0x18f   : > { %v597_v49 = vadd.f32 1.0, %v1518_v46  ;;  %v1381_v50 = vpop.f32.mrb[15].mxu0 }
 0x190   : > { %v1520_v51 = vpop.eup %1519  ;;  %v527_v52 = vadd.f32 %v1379_v47, %v2083_v10  ;;  %v1382_v53 = vadd.f32 %v1381_v50, %v1380_v48 }
 0x191   : > { %v598_v54 = vadd.f32 1.0, %v1520_v51  ;;  %1529 = vrcp.f32 %v597_v49 }
 0x192   : > { %v1251_v55 = vmul.f32 -1.442695, %v527_v52  ;;  %v530_v56 = vadd.f32 %v1382_v53, %v2083_v10 }
 0x193   : > { %1531 = vrcp.f32 %v598_v54  ;;  %v1522_v57 = vpop.eup %1521 }
 0x194   : > { %1533 = vpow2.f32 %v1251_v55  ;;  %v1252_v58 = vmul.f32 -1.442695, %v530_v56  ;;  %v1383_v59 = vpop.f32.mrb[16].mxu0 }
 0x195   : > { %v1524_v60 = vpop.eup %1523  ;;  %v1384_v61 = vpop.f32.mrb[17].mxu0 }
 0x196   : > { %v1526_v62 = vpop.eup %1525  ;;  %1535 = vpow2.f32 %v1252_v58  ;;  %v1385_v63 = vadd.f32 %v1384_v61, %v1383_v59  ;;  %v1386_v0 = vpop.f32.mrb[18].mxu0  ;;  %v634_v1 = vpack.c.bf16 %v1524_v60, %v1522_v57  ;;  %v659_v60 = vlaneseq }
 0x197   : > { %v599_v2 = vadd.f32 1.0, %v1526_v62  ;;  %v1387_v3 = vpop.f32.mrb[19].mxu0 }
 0x198   : > { %v1528_v4 = vpop.eup %1527  ;;  %v535_v5 = vadd.f32 %v1385_v63, %v2083_v10  ;;  %v1388_v6 = vadd.f32 %v1387_v3, %v1386_v0  ;;  %782 = vmatmul.mubr.bf16.vlgmr.msra.gmra.mrb[0].mxu1 %v634_v1  ;;  %v660_v61 = vshrl.u32 %v659_v60, 7  ;;  %v657_v63 = vld [vmem:[%s2220_s4] sm:$0x3] }
 0x199   : > { %v600_v7 = vadd.f32 1.0, %v1528_v4  ;;  %791 = vmatprep.mubr.bf16.mxu1 %v1834_v8  ;;  %1537 = vrcp.f32 %v599_v2 }
 0x19a   : > { %v1253_v9 = vmul.f32 -1.442695, %v535_v5  ;;  %v538_v11 = vadd.f32 %v1388_v6, %v2083_v10  ;;  %v661_v62 = vsub.s32 0, %v660_v61  ;;  %v665_v0 = vsub.s32 1, %v660_v61 }
 0x19b   : > { %1539 = vrcp.f32 %v600_v7  ;;  %v1530_v12 = vpop.eup %1529 }
 0x19c   : > { %1541 = vpow2.f32 %v1253_v9  ;;  %v1254_v13 = vmul.f32 -1.442695, %v538_v11  ;;  %v1389_v14 = vpop.f32.mrb[20].mxu0  ;;  %v2107_v1 = vrot.slane %v657_v63, %v661_v62  ;;  %v2109_v2 = vrot.slane %v657_v63, %v665_v0 }
 0x19d   : > { %v1532_v15 = vpop.eup %1531  ;;  %v1390_v16 = vpop.f32.mrb[21].mxu0 }
 0x19e   : > { %v1534_v17 = vpop.eup %1533  ;;  %1543 = vpow2.f32 %v1254_v13  ;;  %v1391_v18 = vadd.f32 %v1390_v16, %v1389_v14  ;;  %v1392_v19 = vpop.f32.mrb[22].mxu0  ;;  %v635_v20 = vpack.c.bf16 %v1532_v15, %v1530_v12 }
 0x19f   : > { %v601_v21 = vadd.f32 1.0, %v1534_v17  ;;  %v1393_v22 = vpop.f32.mrb[23].mxu0 }
 0x1a0   : > { %v1536_v23 = vpop.eup %1535  ;;  %v543_v24 = vadd.f32 %v1391_v18, %v2083_v10  ;;  %v1394_v25 = vadd.f32 %v1393_v22, %v1392_v19  ;;  %792 = vmatmul.mubr.bf16.gmra.mrb[4].mxu1 %v635_v20 }
 0x1a1   : > { %v602_v26 = vadd.f32 1.0, %v1536_v23  ;;  %801 = vmatprep.mubr.bf16.mxu1 %v1834_v8  ;;  %1545 = vrcp.f32 %v601_v21 }
 0x1a2   : > { %v1255_v27 = vmul.f32 -1.442695, %v543_v24  ;;  %v546_v28 = vadd.f32 %v1394_v25, %v2083_v10 }
 0x1a3   : > { %1547 = vrcp.f32 %v602_v26  ;;  %v1538_v29 = vpop.eup %1537 }
 0x1a4   : > { %1549 = vpow2.f32 %v1255_v27  ;;  %v1256_v30 = vmul.f32 -1.442695, %v546_v28  ;;  %v1395_v31 = vpop.f32.mrb[24].mxu0 }
 0x1a5   : > { %v1540_v32 = vpop.eup %1539  ;;  %v1396_v33 = vpop.f32.mrb[25].mxu0 }
 0x1a6   : > { %v1542_v34 = vpop.eup %1541  ;;  %1551 = vpow2.f32 %v1256_v30  ;;  %v1397_v35 = vadd.f32 %v1396_v33, %v1395_v31  ;;  %v1398_v36 = vpop.f32.mrb[26].mxu0  ;;  %v636_v37 = vpack.c.bf16 %v1540_v32, %v1538_v29 }
 0x1a7   : > { %v603_v38 = vadd.f32 1.0, %v1542_v34  ;;  %v1399_v39 = vpop.f32.mrb[27].mxu0 }
 0x1a8   : > { %v1544_v40 = vpop.eup %1543  ;;  %v551_v41 = vadd.f32 %v1397_v35, %v2083_v10  ;;  %802 = vmatmul.mubr.bf16.gmra.mrb[8].mxu1 %v636_v37 }
 0x1a9   : > { %v604_v42 = vadd.f32 1.0, %v1544_v40  ;;  %811 = vmatprep.mubr.bf16.mxu1 %v1834_v8  ;;  %1553 = vrcp.f32 %v603_v38 }
 0x1aa   : > { %v1257_v43 = vmul.f32 -1.442695, %v551_v41 }
 0x1ab   : > { %1555 = vrcp.f32 %v604_v42  ;;  %v1546_v44 = vpop.eup %1545 }
 0x1ac   : > { %1557 = vpow2.f32 %v1257_v43 }
 0x1ad   : > { %v1548_v45 = vpop.eup %1547 }
 0x1ae   : > { %v1550_v46 = vpop.eup %1549  ;;  %v637_v47 = vpack.c.bf16 %v1548_v45, %v1546_v44 }
 0x1af   : > { %v605_v48 = vadd.f32 1.0, %v1550_v46 }
 0x1b0   : > { %v1552_v49 = vpop.eup %1551  ;;  %812 = vmatmul.mubr.bf16.gmra.mrb[12].mxu1 %v637_v47 }
 0x1b1   : > { %v606_v50 = vadd.f32 1.0, %v1552_v49  ;;  %821 = vmatprep.mubr.bf16.mxu1 %v1834_v8  ;;  %1559 = vrcp.f32 %v605_v48 }
 0x1b3   : > { %1561 = vrcp.f32 %v606_v50  ;;  %v1554_v10 = vpop.eup %1553 }
 0x1b5   : > { %v1556_v51 = vpop.eup %1555 }
 0x1b6   : > { %v1558_v52 = vpop.eup %1557  ;;  %v638_v53 = vpack.c.bf16 %v1556_v51, %v1554_v10 }
 0x1b7   : > { %v607_v54 = vadd.f32 1.0, %v1558_v52 }
 0x1b8   : > { %822 = vmatmul.mubr.bf16.gmra.mrb[16].mxu1 %v638_v53 }
 0x1b9   : > { %831 = vmatprep.mubr.bf16.mxu1 %v1834_v8  ;;  %1563 = vrcp.f32 %v607_v54 }
 0x1bb   : > { %v1560_v55 = vpop.eup %1559 }
 0x1bd   : > { %v1562_v56 = vpop.eup %1561 }
 0x1be   : > { %v639_v57 = vpack.c.bf16 %v1562_v56, %v1560_v55 }
 0x1c0   : > { %832 = vmatmul.mubr.bf16.gmra.mrb[20].mxu1 %v639_v57 }
 0x1c1   : > { %841 = vmatprep.mubr.bf16.mxu1 %v1834_v8 }
 0x1c3   : > { %v1564_v58 = vpop.eup %1563 }
 0x1c4   : > { %v640_v59 = vpack.c.bf16 %v1564_v58, %v1564_v58 }
 0x1c8   : > { %842 = vmatmul.mubr.bf16.gmra.mrb[24].mxu1 %v640_v59 }
 0x26b   : > { %v783_v3 = vpop.f32.mrb[0].mxu1 }
 0x26c   : > { %v784_v4 = vadd.f32 %v783_v3, %v2107_v1  ;;  %v785_v5 = vpop.f32.mrb[1].mxu1 }
 0x26d   : > { %v786_v8 = vadd.f32 %v785_v5, %v2109_v2  ;;  %v787_v6 = vpop.f32.mrb[2].mxu1 }
 0x26e   : > { %v1274_v7 = vmul.f32 -1.442695, %v784_v4  ;;  %v788_v9 = vadd.f32 %v787_v6, %v2107_v1  ;;  %v789_v11 = vpop.f32.mrb[3].mxu1 }
 0x26f   : > { %v1275_v12 = vmul.f32 -1.442695, %v786_v8  ;;  %v790_v13 = vadd.f32 %v789_v11, %v2109_v2 }
 0x270   : > { %1565 = vpow2.f32 %v1274_v7  ;;  %v1276_v14 = vmul.f32 -1.442695, %v788_v9 }
 0x271   : > { %1567 = vpow2.f32 %v1275_v12  ;;  %v1277_v15 = vmul.f32 -1.442695, %v790_v13 }
 0x272   : > { %1569 = vpow2.f32 %v1276_v14 }
 0x273   : > { %1571 = vpow2.f32 %v1277_v15  ;;  %v793_v16 = vpop.f32.mrb[4].mxu1 }
 0x274   : > { %v794_v17 = vadd.f32 %v793_v16, %v2107_v1  ;;  %v795_v18 = vpop.f32.mrb[5].mxu1 }
 0x275   : > { %v796_v19 = vadd.f32 %v795_v18, %v2109_v2  ;;  %v797_v20 = vpop.f32.mrb[6].mxu1 }
 0x276   : > { %v1278_v21 = vmul.f32 -1.442695, %v794_v17  ;;  %v798_v22 = vadd.f32 %v797_v20, %v2107_v1  ;;  %v799_v23 = vpop.f32.mrb[7].mxu1 }
 0x277   : > { %v1279_v24 = vmul.f32 -1.442695, %v796_v19  ;;  %v800_v25 = vadd.f32 %v799_v23, %v2109_v2 }
 0x278   : > { %1573 = vpow2.f32 %v1278_v21  ;;  %v1280_v26 = vmul.f32 -1.442695, %v798_v22 }
 0x279   : > { %1575 = vpow2.f32 %v1279_v24  ;;  %v1281_v27 = vmul.f32 -1.442695, %v800_v25 }
 0x27a   : > { %v1566_v28 = vpop.eup %1565  ;;  %1577 = vpow2.f32 %v1280_v26 }
 0x27b   : > { %v1568_v29 = vpop.eup %1567  ;;  %v928_v30 = vadd.f32 1.0, %v1566_v28  ;;  %1579 = vpow2.f32 %v1281_v27  ;;  %v803_v31 = vpop.f32.mrb[8].mxu1 }
 0x27c   : > { %v1570_v32 = vpop.eup %1569  ;;  %v929_v33 = vadd.f32 1.0, %v1568_v29  ;;  %v804_v34 = vadd.f32 %v803_v31, %v2107_v1  ;;  %v805_v35 = vpop.f32.mrb[9].mxu1 }
 0x27d   : > { %v1572_v36 = vpop.eup %1571  ;;  %1581 = vrcp.f32 %v928_v30  ;;  %v930_v37 = vadd.f32 1.0, %v1570_v32  ;;  %v806_v38 = vadd.f32 %v805_v35, %v2109_v2  ;;  %v807_v39 = vpop.f32.mrb[10].mxu1 }
 0x27e   : > { %1583 = vrcp.f32 %v929_v33  ;;  %v931_v40 = vadd.f32 1.0, %v1572_v36  ;;  %v1282_v41 = vmul.f32 -1.442695, %v804_v34  ;;  %v808_v42 = vadd.f32 %v807_v39, %v2107_v1  ;;  %v809_v43 = vpop.f32.mrb[11].mxu1 }
 0x27f   : > { %1585 = vrcp.f32 %v930_v37  ;;  %v1283_v44 = vmul.f32 -1.442695, %v806_v38  ;;  %v810_v45 = vadd.f32 %v809_v43, %v2109_v2 }
 0x280   : > { %1587 = vrcp.f32 %v931_v40  ;;  %v1284_v46 = vmul.f32 -1.442695, %v808_v42 }
 0x281   : > { %1589 = vpow2.f32 %v1282_v41  ;;  %v1285_v47 = vmul.f32 -1.442695, %v810_v45 }
 0x282   : > { %v1574_v48 = vpop.eup %1573  ;;  %1591 = vpow2.f32 %v1283_v44 }
 0x283   : > { %v1576_v49 = vpop.eup %1575  ;;  %v932_v50 = vadd.f32 1.0, %v1574_v48  ;;  %1593 = vpow2.f32 %v1284_v46  ;;  %v813_v10 = vpop.f32.mrb[12].mxu1 }
 0x284   : > { %v1578_v51 = vpop.eup %1577  ;;  %v933_v52 = vadd.f32 1.0, %v1576_v49  ;;  %1595 = vpow2.f32 %v1285_v47  ;;  %v814_v53 = vadd.f32 %v813_v10, %v2107_v1  ;;  %v815_v54 = vpop.f32.mrb[13].mxu1 }
 0x285   : > { %v1580_v55 = vpop.eup %1579  ;;  %1597 = vrcp.f32 %v932_v50  ;;  %v934_v56 = vadd.f32 1.0, %v1578_v51  ;;  %v816_v57 = vadd.f32 %v815_v54, %v2109_v2  ;;  %v817_v58 = vpop.f32.mrb[14].mxu1 }
 0x286   : > { %1599 = vrcp.f32 %v933_v52  ;;  %v935_v59 = vadd.f32 1.0, %v1580_v55  ;;  %v1286_v60 = vmul.f32 -1.442695, %v814_v53  ;;  %v818_v61 = vadd.f32 %v817_v58, %v2107_v1  ;;  %v819_v62 = vpop.f32.mrb[15].mxu1 }
 0x287   : > { %v1582_v63 = vpop.eup %1581  ;;  %1601 = vrcp.f32 %v934_v56  ;;  %v1287_v0 = vmul.f32 -1.442695, %v816_v57  ;;  %v820_v3 = vadd.f32 %v819_v62, %v2109_v2 }
 0x288   : > { %v1584_v4 = vpop.eup %1583  ;;  %1603 = vrcp.f32 %v935_v59  ;;  %v1288_v5 = vmul.f32 -1.442695, %v818_v61 }
 0x289   : > { %v1586_v8 = vpop.eup %1585  ;;  %v1325_v6 = vpack.c.bf16 %v1584_v4, %v1582_v63  ;;  %1605 = vpow2.f32 %v1286_v60  ;;  %v1289_v7 = vmul.f32 -1.442695, %v820_v3 }
 0x28a   : > { %v1588_v9 = vpop.eup %1587  ;;  %1607 = vpow2.f32 %v1287_v0 }
 0x28b   : > { %v1590_v11 = vpop.eup %1589  ;;  %1086 = vst [vmem:[%s2128_s8] sm:$0xff] %v1325_v6  ;;  %v1326_v12 = vpack.c.bf16 %v1588_v9, %v1586_v8  ;;  %1609 = vpow2.f32 %v1288_v5  ;;  %v823_v13 = vpop.f32.mrb[16].mxu1 }
 0x28c   : > { %v1592_v14 = vpop.eup %1591  ;;  %v936_v15 = vadd.f32 1.0, %v1590_v11  ;;  %1611 = vpow2.f32 %v1289_v7  ;;  %v824_v16 = vadd.f32 %v823_v13, %v2107_v1  ;;  %v825_v17 = vpop.f32.mrb[17].mxu1 }
 0x28d   : > { %v1594_v18 = vpop.eup %1593  ;;  %1087 = vst [vmem:[%s2128_s8 + $0x8] sm:$0xff] %v1326_v12  ;;  %v937_v19 = vadd.f32 1.0, %v1592_v14  ;;  %v826_v20 = vadd.f32 %v825_v17, %v2109_v2  ;;  %v827_v21 = vpop.f32.mrb[18].mxu1 }
 0x28e   : > { %v1596_v22 = vpop.eup %1595  ;;  %1613 = vrcp.f32 %v936_v15  ;;  %v938_v23 = vadd.f32 1.0, %v1594_v18  ;;  %v1290_v24 = vmul.f32 -1.442695, %v824_v16  ;;  %v828_v25 = vadd.f32 %v827_v21, %v2107_v1  ;;  %v829_v26 = vpop.f32.mrb[19].mxu1 }
 0x28f   : > { %v1598_v27 = vpop.eup %1597  ;;  %1615 = vrcp.f32 %v937_v19  ;;  %v939_v28 = vadd.f32 1.0, %v1596_v22  ;;  %v1291_v29 = vmul.f32 -1.442695, %v826_v20  ;;  %v830_v30 = vadd.f32 %v829_v26, %v2109_v2 }
 0x290   : > { %v1600_v31 = vpop.eup %1599  ;;  %1617 = vrcp.f32 %v938_v23  ;;  %v1292_v32 = vmul.f32 -1.442695, %v828_v25 }
 0x291   : > { %v1602_v33 = vpop.eup %1601  ;;  %v1327_v34 = vpack.c.bf16 %v1600_v31, %v1598_v27  ;;  %1619 = vrcp.f32 %v939_v28  ;;  %v1293_v35 = vmul.f32 -1.442695, %v830_v30 }
 0x292   : > { %v1604_v36 = vpop.eup %1603  ;;  %1621 = vpow2.f32 %v1290_v24 }
 0x293   : > { %v1606_v37 = vpop.eup %1605  ;;  %1088 = vst [vmem:[%s2128_s8 + $0x10] sm:$0xff] %v1327_v34  ;;  %v1328_v38 = vpack.c.bf16 %v1604_v36, %v1602_v33  ;;  %1623 = vpow2.f32 %v1291_v29  ;;  %v833_v39 = vpop.f32.mrb[20].mxu1 }
 0x294   : > { %v1608_v40 = vpop.eup %1607  ;;  %v940_v41 = vadd.f32 1.0, %v1606_v37  ;;  %1625 = vpow2.f32 %v1292_v32  ;;  %v834_v42 = vadd.f32 %v833_v39, %v2107_v1  ;;  %v835_v43 = vpop.f32.mrb[21].mxu1 }
 0x295   : > { %v1610_v44 = vpop.eup %1609  ;;  %1089 = vst [vmem:[%s2128_s8 + $0x18] sm:$0xff] %v1328_v38  ;;  %v941_v45 = vadd.f32 1.0, %v1608_v40  ;;  %1627 = vpow2.f32 %v1293_v35  ;;  %v836_v46 = vadd.f32 %v835_v43, %v2109_v2  ;;  %v837_v47 = vpop.f32.mrb[22].mxu1 }
 0x296   : > { %v1612_v48 = vpop.eup %1611  ;;  %1629 = vrcp.f32 %v940_v41  ;;  %v942_v49 = vadd.f32 1.0, %v1610_v44  ;;  %v1294_v50 = vmul.f32 -1.442695, %v834_v42  ;;  %v838_v10 = vadd.f32 %v837_v47, %v2107_v1  ;;  %v839_v51 = vpop.f32.mrb[23].mxu1 }
 0x297   : > { %1631 = vrcp.f32 %v941_v45  ;;  %v943_v52 = vadd.f32 1.0, %v1612_v48  ;;  %v1295_v53 = vmul.f32 -1.442695, %v836_v46  ;;  %v840_v54 = vadd.f32 %v839_v51, %v2109_v2 }
 0x298   : > { %v1614_v55 = vpop.eup %1613  ;;  %1633 = vrcp.f32 %v942_v49  ;;  %v1296_v56 = vmul.f32 -1.442695, %v838_v10 }
 0x299   : > { %v1616_v57 = vpop.eup %1615  ;;  %1635 = vrcp.f32 %v943_v52  ;;  %v1297_v58 = vmul.f32 -1.442695, %v840_v54 }
 0x29a   : > { %v1618_v59 = vpop.eup %1617  ;;  %v1329_v60 = vpack.c.bf16 %v1616_v57, %v1614_v55  ;;  %1637 = vpow2.f32 %v1294_v50 }
 0x29b   : > { %v1620_v61 = vpop.eup %1619  ;;  %1639 = vpow2.f32 %v1295_v53  ;;  %v843_v62 = vpop.f32.mrb[24].mxu1 }
 0x29c   : > { %v1622_v63 = vpop.eup %1621  ;;  %1090 = vst [vmem:[%s2128_s8 + $0x20] sm:$0xff] %v1329_v60  ;;  %v1330_v0 = vpack.c.bf16 %v1620_v61, %v1618_v59  ;;  %1641 = vpow2.f32 %v1296_v56  ;;  %v844_v3 = vadd.f32 %v843_v62, %v2107_v1  ;;  %v845_v4 = vpop.f32.mrb[25].mxu1 }
 0x29d   : > { %v1624_v5 = vpop.eup %1623  ;;  %v944_v8 = vadd.f32 1.0, %v1622_v63  ;;  %1643 = vpow2.f32 %v1297_v58  ;;  %v846_v6 = vadd.f32 %v845_v4, %v2109_v2  ;;  %v847_v7 = vpop.f32.mrb[26].mxu1 }
 0x29e   : > { %v1626_v9 = vpop.eup %1625  ;;  %1091 = vst [vmem:[%s2128_s8 + $0x28] sm:$0xff] %v1330_v0  ;;  %v945_v11 = vadd.f32 1.0, %v1624_v5  ;;  %v848_v12 = vpop.f32.mrb[27].mxu1  ;;  %v1298_v15 = vmul.f32 -1.442695, %v844_v3 }
 0x29f   : > { %v1628_v13 = vpop.eup %1627  ;;  %1645 = vrcp.f32 %v944_v8  ;;  %v946_v14 = vadd.f32 1.0, %v1626_v9  ;;  %v1299_v1 = vmul.f32 -1.442695, %v846_v6 }
 0x2a0   : > { %v1630_v16 = vpop.eup %1629  ;;  %1647 = vrcp.f32 %v945_v11  ;;  %v947_v17 = vadd.f32 1.0, %v1628_v13 }
 0x2a1   : > { %v1632_v18 = vpop.eup %1631  ;;  %1649 = vrcp.f32 %v946_v14 }
 0x2a2   : > { %v1634_v19 = vpop.eup %1633  ;;  %v1331_v20 = vpack.c.bf16 %v1632_v18, %v1630_v16  ;;  %1651 = vrcp.f32 %v947_v17 }
 0x2a3   : > { %v1636_v2 = vpop.eup %1635  ;;  %1653 = vpow2.f32 %v1298_v15 }
 0x2a4   : > { %v1638_v21 = vpop.eup %1637  ;;  %1092 = vst [vmem:[%s2128_s8 + $0x30] sm:$0xff] %v1331_v20  ;;  %v1332_v22 = vpack.c.bf16 %v1636_v2, %v1634_v19  ;;  %1655 = vpow2.f32 %v1299_v1 }
 0x2a5   : > { %v1640_v23 = vpop.eup %1639  ;;  %v948_v24 = vadd.f32 1.0, %v1638_v21 }
 0x2a6   : > { %v1642_v25 = vpop.eup %1641  ;;  %1093 = vst [vmem:[%s2128_s8 + $0x38] sm:$0xff] %v1332_v22  ;;  %v949_v26 = vadd.f32 1.0, %v1640_v23 }
 0x2a7   : > { %v1644_v27 = vpop.eup %1643  ;;  %1657 = vrcp.f32 %v948_v24  ;;  %v950_v28 = vadd.f32 1.0, %v1642_v25 }
 0x2a8   : > { %1659 = vrcp.f32 %v949_v26  ;;  %v951_v29 = vadd.f32 1.0, %v1644_v27 }
 0x2a9   : > { %v1646_v30 = vpop.eup %1645  ;;  %1661 = vrcp.f32 %v950_v28 }
 0x2aa   : > { %v1648_v31 = vpop.eup %1647  ;;  %1663 = vrcp.f32 %v951_v29 }
 0x2ab   : > { %v1650_v32 = vpop.eup %1649  ;;  %v1333_v33 = vpack.c.bf16 %v1648_v31, %v1646_v30 }
 0x2ac   : > { %v1652_v34 = vpop.eup %1651 }
 0x2ad   : > { %v1654_v35 = vpop.eup %1653  ;;  %1094 = vst [vmem:[%s2128_s8 + $0x40] sm:$0xff] %v1333_v33  ;;  %v1334_v36 = vpack.c.bf16 %v1652_v34, %v1650_v32 }
 0x2ae   : > { %v1656_v37 = vpop.eup %1655  ;;  %v952_v38 = vadd.f32 1.0, %v1654_v35 }
 0x2af   : > { %1095 = vst [vmem:[%s2128_s8 + $0x48] sm:$0xff] %v1334_v36  ;;  %v953_v39 = vadd.f32 1.0, %v1656_v37 }
 0x2b0   : > { %1665 = vrcp.f32 %v952_v38 }
 0x2b1   : > { %v1658_v40 = vpop.eup %1657  ;;  %1667 = vrcp.f32 %v953_v39 }
 0x2b2   : > { %v1660_v41 = vpop.eup %1659 }
 0x2b3   : > { %v1662_v42 = vpop.eup %1661  ;;  %v1335_v43 = vpack.c.bf16 %v1660_v41, %v1658_v40 }
 0x2b4   : > { %v1664_v44 = vpop.eup %1663 }
 0x2b5   : > { %1096 = vst [vmem:[%s2128_s8 + $0x50] sm:$0xff] %v1335_v43  ;;  %v1336_v45 = vpack.c.bf16 %v1664_v44, %v1662_v42 }
 0x2b7   : > { %1097 = vst [vmem:[%s2128_s8 + $0x58] sm:$0xff] %v1336_v45 }
 0x2b8   : > { %1106 = sbr.rel (!%p2237_p9) target bundleno = 731 (0x2db), region = 56 }
 0x2ba   : > { %v1666_v46 = vpop.eup %1665 }
 0x2bb   : > { %v1668_v47 = vpop.eup %1667 }
 0x2bc   : > { %v1337_v48 = vpack.c.bf16 %v1668_v47, %v1666_v46 }
 0x2be   : > { %1098 = vst [vmem:[%s2128_s8 + $0x60] sm:$0xff] %v1337_v48 }
 0x2bf   : > { %s2247_s25 = smov (!%p1109_p10, %s1108_s25), 13 }
 0x2c0   : > { %s2157_s28 = sshll.u32 %s2247_s25, 7 }
 0x2c1   : > { %s1114_s9 = ssub.s32 1664, %s2157_s28 }
 0x2c2   : > { %1115 = vsyncadd %s1100_s17, %s1114_s9  ;;  %p1315_p1 = scmp.ne.s32.totalorder %s2157_s28, 0  ;;  %s1342_s30 = smul.u32 1664, %s1889_s22 }
 0x2c3   : > { %s1121_s27 = sshll.u32 %s2128_s8, 4  ;;  %s1835_s29 = smov [#allocation8]   ;;  %s2170_s27 = int_to_ptr.vmem [resolvable:$true] %s1121_s27 }
 0x2c4   : > { %s2168_s15 = scalar_lea.hbm %s2221_s5, %s1342_s30  ;;  %s1753_s16 = scalar_lea.vmem %s2170_s27, %s2157_s28 }
 0x2c5   : > { %p1754_p3 = scmp.ne.s32.totalorder %s2170_s27, %s1753_s16  ;;  %s1757_s7 = sshll.u32 %s1835_s29, 4  ;;  %s1758_s7 = int_to_ptr.vmem [resolvable:$false] %s1757_s7 }
 0x2c6   : > { %s1759_s22 = scalar_lea.vmem %s1758_s7, 3328  ;;  %p1760_p11 = scmp.lt.s32.totalorder %s2170_s27, %s1758_s7 }
 0x2c7   : > { %p1755_p5 = pnand %p1754_p3, %p1315_p1  ;;  %p1761_p13 = scmp.lt.s32.totalorder %s1759_s22, %s1753_s16 }
 0x2c9   : > { %p1756_p6 = pneg %p1755_p5  ;;  %p1762_p0 = por %p1761_p13, %p1760_p11 }
 0x2cb   : > { %p1763_p12 = pnand %p1762_p0, %p1756_p6 }
 0x2cd   : > { %1766 = shalt.err (!%p1763_p12)
}
 0x2ce   : > { %s1767_s10 = scalar_lea.hbm %s2168_s15, %s2157_s28  ;;  %s1771_s8 = scalar_lea.hbm %s2221_s5, 3200 }
 0x2cf   : > { %p1768_p7 = scmp.ne.s32.totalorder %s2168_s15, %s1767_s10  ;;  %p1772_p9 = scmp.lt.u32.totalorder %s2168_s15, %s2221_s5 }
 0x2d0   : > { %p1773_p10 = scmp.lt.u32.totalorder %s1771_s8, %s1767_s10  ;;  %p1775_p5 = scmp.lt.u32.totalorder %s1767_s10, %s2168_s15 }
 0x2d1   : > { %p1769_p2 = pnand %p1768_p7, %p1315_p1 }
 0x2d2   : > { %p1774_p3 = por %p1773_p10, %p1772_p9 }
 0x2d3   : > { %p1770_p8 = pneg %p1769_p2 }
 0x2d4   : > { %p1776_p6 = por %p1775_p5, %p1774_p3 }
 0x2d6   : > { %p1777_p11 = pnand %p1776_p6, %p1770_p8 }
 0x2d8   : > { %1780 = shalt.err (!%p1777_p11)
}
 0x2d9   : > { %s1836_s9 = smov 128   ;;  %s1837_s30 = smov 8  }
 0x2da   : > { %1127 = dma.vmem_to_hbm [thread:$0]  (%p1315_p1), %s2170_s27, %s2157_s28, %s2168_s15, %s1100_s17, %s1836_s9, %s1836_s9, %s1837_s30  }
 0x2db PF: > { %s1136_s11 = sand.u32 1, %s1811_s18   ;;  %p2238_p13 = scmp.ne.s32.totalorder %s2229_s6, 0 }
 0x2dc   : > { %s1137_s14 = scalar_lea.sflag [#allocation4], %s1136_s11 }
 0x2dd   : > { %p1422_p0 = pnand %p1217_p4, %p2238_p13 }
 0x2df   : > { %1806 = dma.done.wait (!%p1422_p0), %s1137_s14, 1664  }
 0x2e0   : > { %1808 = vsyncadd (!%p1422_p0), %s1137_s14, 4294965632  ;;  %s2239_s16 = sld [smem:[#allocation12_spill]]  ;;  %p19_p12 = scmp.ge.s32.totalorder %s1893_s24, 4  }
 0x2e1   : > { %s2240_s18 = smov %s1815_s19  ;;  %s2241_s19 = smov %s1819_s20 }
 0x2e2   : > { %s2243_s21 = smov %s1893_s24  ;;  %21 = sbr.rel (!%p19_p12) target bundleno = 6 (0x6), region = 93 }
 0x2e6   : > { %s2242_s20 = smov %s2239_s16 }
 0x2e9   :  { %1142 = vsyncpa [#allocation3], 1 }
 0x2ea   :  { %1144 = vsyncpa [#allocation3 + $0x1], 1 }
 0x2eb   :  { %1145 = vsyncpa [#allocation6], 1 }
 0x2ec   :  { %1146 = vsyncpa [#allocation4], 1 }
 0x2ed   :  { %1148 = vsyncpa [#allocation4 + $0x1], 1 }

</bundles_post_ra>
